<compile_context>
chip_gen: v7x
topology: tpu7x:2x2x1
jax: 0.10.0
libtpu: 0.0.40
codegen_flags: <defaults>
</compile_context>

<pallas_src>
import jax
import jax.numpy as jnp
from jax.experimental import pallas as pl
from jax.experimental.pallas import tpu as pltpu

H1 = 48
H2 = 32
LANE = 128
HPAD = ((max(H1, H2) + LANE - 1) // LANE) * LANE   # 128 (module constants)


def _round_up(n, m):
    return ((n + m - 1) // m) * m


# --------------------------------------------------------------------------- #
# Kernel
# --------------------------------------------------------------------------- #
def planner_kernel(alpha_ref, x_ref, w1_ref, w2_ref, w3_ref, bias_ref, b3_ref, o_ref):
    """Fused 3-layer MLP; BatchNorm already folded into w2/w3/biases by prepare_params."""
    a1 = alpha_ref[0]            # PReLU slope, layer 1 (scalar from SMEM)
    a2 = alpha_ref[1]            # PReLU slope, layer 2

    # ---- Layer 1: Linear(in, H1) + PReLU ----
    h = jnp.dot(x_ref[...], w1_ref[...], preferred_element_type=jnp.float32)
    h = h + bias_ref[0:1, :]
    h = jnp.where(h >= 0, h, a1 * h)

    # ---- Layer 2: Linear(H1, H2) + PReLU (BN1 folded into w2/b2) ----
    h = jnp.dot(h.astype(w2_ref.dtype), w2_ref[...],
                preferred_element_type=jnp.float32)
    h = h + bias_ref[1:2, :]
    h = jnp.where(h >= 0, h, a2 * h)

    # ---- Layer 3: Linear(H2, out) (BN2 folded into w3/b3), real output width ----
    out = jnp.dot(h.astype(w3_ref.dtype), w3_ref[...],
                  preferred_element_type=jnp.float32)
    out = out + b3_ref[...]
    o_ref[...] = out.astype(o_ref.dtype)


# --------------------------------------------------------------------------- #
# One-time parameter preparation (hoisted off the per-call path)
# --------------------------------------------------------------------------- #
def prepare_params(params, *, compute_dtype=jnp.bfloat16):
    """Fold eval-mode BatchNorm into the downstream linears, pad hidden dims to 128
    lanes, pack biases/alphas, and cast weights to the compute dtype. Run once."""
    w1 = params["w1"]
    b1 = params["b1"].reshape(-1)
    s1 = params["s1"].reshape(-1)
    sh1 = params["sh1"].reshape(1, -1)
    s2 = params["s2"].reshape(-1)
    sh2 = params["sh2"].reshape(1, -1)

    # Algebraically exact eval-mode folding: BN(y) @ W = y @ (s[:,None]*W) + sh @ W.
    w2 = s1[:, None] * params["w2"]
    b2 = (sh1 @ params["w2"]).reshape(-1) + params["b2"].reshape(-1)
    w3 = s2[:, None] * params["w3"]
    b3 = (sh2 @ params["w3"]).reshape(-1) + params["b3"].reshape(-1)

    in_size = w1.shape[0]
    out_size = w3.shape[1]

    def pad2(a, r, c):
        return jnp.pad(a, ((0, r - a.shape[0]), (0, c - a.shape[1])))

    w1p = pad2(w1, in_size, HPAD).astype(compute_dtype)      # (in, 128)   x feature dim unpadded
    w2p = pad2(w2, HPAD, HPAD).astype(compute_dtype)         # (128, 128)
    w3p = pad2(w3, HPAD, out_size).astype(compute_dtype)     # (128, out)  real output width

    bias12 = jnp.stack([jnp.pad(b1, (0, HPAD - H1)),
                        jnp.pad(b2, (0, HPAD - H2))]).astype(jnp.float32)   # (2, 128)
    b3p = b3.reshape(1, out_size).astype(jnp.float32)                        # (1, out)

    alphas = jnp.stack([params["a1"].reshape(()),
                        params["a2"].reshape(())]).astype(jnp.float32)       # (2,) -> SMEM

    return dict(alphas=alphas, w1=w1p, w2=w2p, w3=w3p, bias12=bias12, b3=b3p,
                in_size=in_size, out_size=out_size, compute_dtype=compute_dtype)


# --------------------------------------------------------------------------- #
# Forward wrapper
# --------------------------------------------------------------------------- #
def _pick_tile_m(batch, tile_m):
    """Balanced batch tile: multiple of 8, limits last-tile padding waste, and
    prefers >=2 grid steps so v7x megacore can shard the 'parallel' axis."""
    b8 = _round_up(batch, 8)
    if b8 <= 8:
        return 8
    nt = max(2, pl.cdiv(b8, tile_m))
    return min(tile_m, _round_up(pl.cdiv(b8, nt), 8))


def imitation_planner_forward(x, prep, *, tile_m=512, out_dtype=jnp.float32):
    """x: (B, input_size) f32. prep: output of prepare_params()."""
    B, in_size = x.shape
    assert in_size == prep["in_size"], "input feature size mismatch"
    out_size = prep["out_size"]
    cdt = prep["compute_dtype"]

    TM = _pick_tile_m(B, tile_m)
    nt = pl.cdiv(B, TM)
    B_pad = nt * TM

    xp = x if B_pad == B else jnp.pad(x, ((0, B_pad - B), (0, 0)))
    xp = xp.astype(cdt)

    w_item = jnp.dtype(cdt).itemsize
    cost = pl.CostEstimate(
        flops=2 * B_pad * (in_size * H1 + H1 * H2 + H2 * out_size),
        transcendentals=0,
        bytes_accessed=(xp.size * w_item
                        + (prep["w1"].size + prep["w2"].size + prep["w3"].size) * w_item
                        + (prep["bias12"].size + prep["b3"].size) * 4
                        + B_pad * out_size * jnp.dtype(out_dtype).itemsize),
    )

    out = pl.pallas_call(
        planner_kernel,
        out_shape=jax.ShapeDtypeStruct((B_pad, out_size), out_dtype),
        grid=(nt,),
        in_specs=[
            pl.BlockSpec(memory_space=pltpu.MemorySpace.SMEM),      # PReLU slopes (2,)
            pl.BlockSpec((TM, in_size), lambda i: (i, 0)),          # x tile (streams)
            pl.BlockSpec((in_size, HPAD), lambda i: (0, 0)),        # w1 (resident)
            pl.BlockSpec((HPAD, HPAD), lambda i: (0, 0)),           # w2 (BN1 folded, resident)
            pl.BlockSpec((HPAD, out_size), lambda i: (0, 0)),       # w3 (BN2 folded, resident)
            pl.BlockSpec((2, HPAD), lambda i: (0, 0)),              # biases 1,2
            pl.BlockSpec((1, out_size), lambda i: (0, 0)),          # bias 3
        ],
        out_specs=pl.BlockSpec((TM, out_size), lambda i: (i, 0)),   # real-width store
        compiler_params=pltpu.CompilerParams(
            dimension_semantics=("parallel",)),
        cost_estimate=cost,
    )(prep["alphas"], xp, prep["w1"], prep["w2"], prep["w3"],
      prep["bias12"], prep["b3"])

    return out[:B] if B_pad != B else out


# --------------------------------------------------------------------------- #
# Synthetic params + pure-JAX reference (eval-mode semantics)
# --------------------------------------------------------------------------- #
def init_params(key, input_size, output_size):
    ks = jax.random.split(key, 3)
    eps = 1e-5

    def linear(k, fan_in, fan_out):
        bound = 1.0 / jnp.sqrt(jnp.float32(fan_in))
        kw, kb = jax.random.split(k)
        w = jax.random.uniform(kw, (fan_in, fan_out), jnp.float32, -bound, bound)
        b = jax.random.uniform(kb, (1, fan_out), jnp.float32, -bound, bound)
        return w, b

    w1, b1 = linear(ks[0], input_size, H1)
    w2, b2 = linear(ks[1], H1, H2)
    w3, b3 = linear(ks[2], H2, output_size)

    # PReLU default init: shared slope 0.25.
    a1 = jnp.full((1, 1), 0.25, jnp.float32)
    a2 = jnp.full((1, 1), 0.25, jnp.float32)

    # BatchNorm1d eval-mode as per-feature scale/shift (defaults: gamma=1, beta=0,
    # running_mean=0, running_var=1): s = gamma/sqrt(var+eps), sh = beta - mean*s.
    def bn_fold(n):
        gamma = jnp.ones((1, n), jnp.float32)
        beta = jnp.zeros((1, n), jnp.float32)
        rmean = jnp.zeros((1, n), jnp.float32)
        rvar = jnp.ones((1, n), jnp.float32)
        s = gamma / jnp.sqrt(rvar + eps)
        sh = beta - rmean * s
        return s, sh

    s1, sh1 = bn_fold(H1)
    s2, sh2 = bn_fold(H2)

    return dict(w1=w1, b1=b1, a1=a1, s1=s1, sh1=sh1,
                w2=w2, b2=b2, a2=a2, s2=s2, sh2=sh2,
                w3=w3, b3=b3)


def reference_forward(x, p):
    h = x @ p["w1"] + p["b1"]
    h = jnp.where(h >= 0, h, p["a1"][0, 0] * h)
    h = h * p["s1"] + p["sh1"]
    h = h @ p["w2"] + p["b2"]
    h = jnp.where(h >= 0, h, p["a2"][0, 0] * h)
    h = h * p["s2"] + p["sh2"]
    return h @ p["w3"] + p["b3"]


if __name__ == "__main__":
    key = jax.random.PRNGKey(0)
    k_x, k_p, k_x2 = jax.random.split(key, 3)

    batch, input_size, output_size = 8, 32, 16
    x = jax.random.normal(k_x, (batch, input_size), jnp.float32)
    params = init_params(k_p, input_size, output_size)
    ref = reference_forward(x, params)

    # Exact f32 path (matches eval-mode PyTorch numerics).
    prep_f32 = prepare_params(params, compute_dtype=jnp.float32)
    out = jax.block_until_ready(imitation_planner_forward(x, prep_f32))
    assert out.shape == (batch, output_size)
    assert jnp.allclose(out, ref, atol=1e-4, rtol=1e-4), "f32 mismatch vs reference"

    # Default bf16-operand path (f32 MXU accumulation); halves HBM bytes on v5e/v6e/v7x.
    prep_bf16 = prepare_params(params)
    out_bf16 = jax.block_until_ready(imitation_planner_forward(x, prep_bf16))
    assert out_bf16.shape == (batch, output_size)
    assert bool(jnp.all(jnp.isfinite(out_bf16)))
    assert jnp.allclose(out_bf16, ref, atol=1e-1, rtol=1e-1), "bf16 mismatch vs reference"

    # Multi-tile grid path (2 grid steps, batch padded only on the last tile).
    batch2 = 40
    x2 = jax.random.normal(k_x2, (batch2, input_size), jnp.float32)
    ref2 = reference_forward(x2, params)
    out2 = jax.block_until_ready(imitation_planner_forward(x2, prep_f32))
    assert out2.shape == (batch2, output_size)
    assert jnp.allclose(out2, ref2, atol=1e-4, rtol=1e-4), "multi-tile mismatch vs reference"

    print("KERNEL_OK")
</pallas_src>

<mosaic_0001>
module attributes {stable_mosaic.version = 11 : i64} {
  func.func @planner_kernel(%arg0: i32, %arg1: memref<2xf32, #tpu.memory_space<smem>>, %arg2: memref<8x32xf32, #tpu.memory_space<vmem>>, %arg3: memref<32x128xf32, #tpu.memory_space<vmem>>, %arg4: memref<128x128xf32, #tpu.memory_space<vmem>>, %arg5: memref<128x16xf32, #tpu.memory_space<vmem>>, %arg6: memref<2x128xf32, #tpu.memory_space<vmem>>, %arg7: memref<1x16xf32, #tpu.memory_space<vmem>>, %arg8: memref<8x16xf32, #tpu.memory_space<vmem>>) attributes {dimension_semantics = [#tpu.dimension_semantics<parallel>], iteration_bounds = array<i64: 1>, scalar_prefetch = 0 : i64, scratch_operands = 0 : i64, tpu.core_type = #tpu.core_type<tc>, window_params = [{transform_indices = @transform_0, window_bounds = array<i64: 2>}, {transform_indices = @transform_1, window_bounds = array<i64: 8, 32>}, {pipeline_mode = #tpu.pipeline_mode<synchronous>, transform_indices = @transform_2, window_bounds = array<i64: 32, 128>}, {pipeline_mode = #tpu.pipeline_mode<synchronous>, transform_indices = @transform_3, window_bounds = array<i64: 128, 128>}, {pipeline_mode = #tpu.pipeline_mode<synchronous>, transform_indices = @transform_4, window_bounds = array<i64: 128, 16>}, {pipeline_mode = #tpu.pipeline_mode<synchronous>, transform_indices = @transform_5, window_bounds = array<i64: 2, 128>}, {pipeline_mode = #tpu.pipeline_mode<synchronous>, transform_indices = @transform_6, window_bounds = array<i64: 1, 16>}, {transform_indices = @transform_7, window_bounds = array<i64: 8, 16>}]} {
    %c0 = arith.constant 0 : index
    %0 = memref.load %arg1[%c0] : memref<2xf32, #tpu.memory_space<smem>>
    %c1 = arith.constant 1 : index
    %1 = memref.load %arg1[%c1] : memref<2xf32, #tpu.memory_space<smem>>
    %c0_0 = arith.constant 0 : index
    %c0_1 = arith.constant 0 : index
    %2 = vector.load %arg2[%c0_0, %c0_1] : memref<8x32xf32, #tpu.memory_space<vmem>>, vector<8x32xf32>
    %c0_2 = arith.constant 0 : index
    %c0_3 = arith.constant 0 : index
    %3 = vector.load %arg3[%c0_2, %c0_3] : memref<32x128xf32, #tpu.memory_space<vmem>>, vector<32x128xf32>
    %cst = arith.constant dense<0.000000e+00> : vector<8x128xf32>
    %4 = tpu.matmul %2, %3, %cst {dimension_numbers = #tpu.dot_dimension_numbers<[1], [0], [0], [1], [0, 0, 1, 1], [], []>} : vector<8x32xf32>, vector<32x128xf32>, vector<8x128xf32> -> vector<8x128xf32>
    %c0_4 = arith.constant 0 : index
    %c0_5 = arith.constant 0 : index
    %5 = vector.load %arg6[%c0_4, %c0_5] : memref<2x128xf32, #tpu.memory_space<vmem>>, vector<1x128xf32>
    %6 = vector.broadcast %5 : vector<1x128xf32> to vector<8x128xf32>
    %7 = arith.addf %4, %6 : vector<8x128xf32>
    %cst_6 = arith.constant 0.000000e+00 : f32
    %8 = vector.broadcast %cst_6 : f32 to vector<8x128xf32>
    %9 = arith.cmpf oge, %7, %8 : vector<8x128xf32>
    %10 = vector.broadcast %0 : f32 to vector<8x128xf32>
    %11 = arith.mulf %10, %7 : vector<8x128xf32>
    %12 = arith.select %9, %7, %11 : vector<8x128xi1>, vector<8x128xf32>
    %c0_7 = arith.constant 0 : index
    %c0_8 = arith.constant 0 : index
    %13 = vector.load %arg4[%c0_7, %c0_8] : memref<128x128xf32, #tpu.memory_space<vmem>>, vector<128x128xf32>
    %cst_9 = arith.constant dense<0.000000e+00> : vector<8x128xf32>
    %14 = tpu.matmul %12, %13, %cst_9 {dimension_numbers = #tpu.dot_dimension_numbers<[1], [0], [0], [1], [0, 0, 1, 1], [], []>} : vector<8x128xf32>, vector<128x128xf32>, vector<8x128xf32> -> vector<8x128xf32>
    %c1_10 = arith.constant 1 : index
    %c0_11 = arith.constant 0 : index
    %15 = vector.load %arg6[%c1_10, %c0_11] : memref<2x128xf32, #tpu.memory_space<vmem>>, vector<1x128xf32>
    %16 = vector.broadcast %15 : vector<1x128xf32> to vector<8x128xf32>
    %17 = arith.addf %14, %16 : vector<8x128xf32>
    %cst_12 = arith.constant 0.000000e+00 : f32
    %18 = vector.broadcast %cst_12 : f32 to vector<8x128xf32>
    %19 = arith.cmpf oge, %17, %18 : vector<8x128xf32>
    %20 = vector.broadcast %1 : f32 to vector<8x128xf32>
    %21 = arith.mulf %20, %17 : vector<8x128xf32>
    %22 = arith.select %19, %17, %21 : vector<8x128xi1>, vector<8x128xf32>
    %c0_13 = arith.constant 0 : index
    %c0_14 = arith.constant 0 : index
    %23 = vector.load %arg5[%c0_13, %c0_14] : memref<128x16xf32, #tpu.memory_space<vmem>>, vector<128x16xf32>
    %cst_15 = arith.constant dense<0.000000e+00> : vector<8x16xf32>
    %24 = tpu.matmul %22, %23, %cst_15 {dimension_numbers = #tpu.dot_dimension_numbers<[1], [0], [0], [1], [0, 0, 1, 1], [], []>} : vector<8x128xf32>, vector<128x16xf32>, vector<8x16xf32> -> vector<8x16xf32>
    %c0_16 = arith.constant 0 : index
    %c0_17 = arith.constant 0 : index
    %25 = vector.load %arg7[%c0_16, %c0_17] : memref<1x16xf32, #tpu.memory_space<vmem>>, vector<1x16xf32>
    %26 = vector.broadcast %25 : vector<1x16xf32> to vector<8x16xf32>
    %27 = arith.addf %24, %26 : vector<8x16xf32>
    %c0_18 = arith.constant 0 : index
    %c0_19 = arith.constant 0 : index
    %28 = vector.load %arg8[%c0_18, %c0_19] : memref<8x16xf32, #tpu.memory_space<vmem>>, vector<8x16xf32>
    tpu.vector_store %arg8[%c0_18, %c0_19], %27 {strides = array<i32>} : memref<8x16xf32, #tpu.memory_space<vmem>>, vector<8x16xf32>,
    return
  }
  func.func @transform_0(%arg0: i32) -> i32 {
    %c0_i32 = arith.constant 0 : i32
    %c0_i32_0 = arith.constant 0 : i32
    return %c0_i32 : i32
  }
  func.func @transform_1(%arg0: i32) -> (i32, i32) {
    %c0_i32 = arith.constant 0 : i32
    %c0_i32_0 = arith.constant 0 : i32
    return %arg0, %c0_i32 : i32, i32
  }
  func.func @transform_2(%arg0: i32) -> (i32, i32) {
    %c0_i32 = arith.constant 0 : i32
    %c0_i32_0 = arith.constant 0 : i32
    %c0_i32_1 = arith.constant 0 : i32
    return %c0_i32, %c0_i32_0 : i32, i32
  }
  func.func @transform_3(%arg0: i32) -> (i32, i32) {
    %c0_i32 = arith.constant 0 : i32
    %c0_i32_0 = arith.constant 0 : i32
    %c0_i32_1 = arith.constant 0 : i32
    return %c0_i32, %c0_i32_0 : i32, i32
  }
  func.func @transform_4(%arg0: i32) -> (i32, i32) {
    %c0_i32 = arith.constant 0 : i32
    %c0_i32_0 = arith.constant 0 : i32
    %c0_i32_1 = arith.constant 0 : i32
    return %c0_i32, %c0_i32_0 : i32, i32
  }
  func.func @transform_5(%arg0: i32) -> (i32, i32) {
    %c0_i32 = arith.constant 0 : i32
    %c0_i32_0 = arith.constant 0 : i32
    %c0_i32_1 = arith.constant 0 : i32
    return %c0_i32, %c0_i32_0 : i32, i32
  }
  func.func @transform_6(%arg0: i32) -> (i32, i32) {
    %c0_i32 = arith.constant 0 : i32
    %c0_i32_0 = arith.constant 0 : i32
    %c0_i32_1 = arith.constant 0 : i32
    return %c0_i32, %c0_i32_0 : i32, i32
  }
  func.func @transform_7(%arg0: i32) -> (i32, i32) {
    %c0_i32 = arith.constant 0 : i32
    %c0_i32_0 = arith.constant 0 : i32
    return %arg0, %c0_i32 : i32, i32
  }
}

</mosaic_0001>

<bundles_post_ra>
// kernel: tpu_custom_call.1
= control target key start
LH: loop header
LB: loop body
LE: loop exit
PB: predicated region body
PF: predicated region fallthrough
CT: control target
= control target key end

     0   :  { %12 = vsyncpa [#allocation5], 0  ;;  %s803_s0 = inlined_call_operand.vmem [shape: f32[2], index: 0, kind: input, shape index: {}]   ;;  %s804_s1 = inlined_call_operand.vmem [shape: f32[8,32], index: 1, kind: input, shape index: {}]   ;;  %s805_s2 = inlined_call_operand.hbm [shape: f32[32,128], index: 2, kind: input, shape index: {}]   ;;  %s806_s3 = inlined_call_operand.vmem [shape: f32[128,128], index: 3, kind: input, shape index: {}]   ;;  %s807_s4 = inlined_call_operand.vmem [shape: f32[128,16], index: 4, kind: input, shape index: {}]   ;;  %s808_s5 = inlined_call_operand.vmem [shape: f32[2,128], index: 5, kind: input, shape index: {}]   ;;  %s809_s6 = inlined_call_operand.vmem [shape: f32[1,16], index: 6, kind: input, shape index: {}]   ;;  %s810_s7 = inlined_call_operand.hbm [shape: f32[8,16], index: 7, kind: output, shape index: {}]  }
   0x1   :  { %13 = vsyncpa [#allocation3], 0 }
   0x2   :  { %14 = vsyncpa [#allocation4], 0  ;;  %s21_s26 = sshll.u32 %s803_s0, 4  ;;  %s22_s26 = int_to_ptr.vmem [resolvable:$true] %s21_s26 }
   0x3   :  { %s537_s27 = scalar_lea.vmem %s22_s26, 16  ;;  %p542_p1 = scmp.lt.s32.totalorder %s22_s26, %s22_s26 }
   0x4   :  { %p538_p0 = scmp.ne.s32.totalorder %s22_s26, %s537_s27  ;;  %p543_p2 = scmp.lt.s32.totalorder %s537_s27, %s537_s27 }
   0x6   :  { %p544_p3 = por %p543_p2, %p542_p1 }
   0x8   :  { %p545_p4 = pnand %p544_p3, %p538_p0 }
   0xa   :  { %548 = shalt.err (!%p545_p4)
}
   0xb   :  { %s599_s28 = smov [#allocation2]   ;;  %s600_s29 = smov [#allocation6]  }
   0xc   :  { %24 = dma.vmem_to_smem %s22_s26, 16, %s599_s28, [#allocation5]  }
   0xd   :  { %s32_s30 = sshll.u32 %s600_s29, 4  ;;  %s549_s10 = scalar_lea.hbm %s805_s2, 512  ;;  %s33_s30 = int_to_ptr.vmem [resolvable:$true] %s32_s30 }
   0xe   :  { %p550_p5 = scmp.ne.s32.totalorder %s805_s2, %s549_s10  ;;  %p553_p6 = scmp.lt.u32.totalorder %s549_s10, %s805_s2 }
  0x10   :  { %p555_p7 = pnand %p553_p6, %p550_p5 }
  0x12   :  { %558 = shalt.err (!%p555_p7)
}
  0x13   :  { %s559_s14 = scalar_lea.vmem %s33_s30, 512  ;;  %p564_p9 = scmp.lt.s32.totalorder %s33_s30, %s33_s30 }
  0x14   :  { %p560_p8 = scmp.ne.s32.totalorder %s33_s30, %s559_s14  ;;  %p565_p10 = scmp.lt.s32.totalorder %s559_s14, %s559_s14 }
  0x16   :  { %p566_p11 = por %p565_p10, %p564_p9 }
  0x18   :  { %p567_p12 = pnand %p566_p11, %p560_p8 }
  0x1a   :  { %570 = shalt.err (!%p567_p12)
}
  0x1b   :  { %s601_s15 = smov 128   ;;  %s602_s16 = smov 8  }
  0x1c   :  { %38 = dma.hbm_to_vmem [thread:$0]  %s805_s2, 512, %s33_s30, [#allocation3], %s601_s15, %s601_s15, %s602_s16  }
  0x1d   :  { %593 = dma.done.wait [#allocation5], 16  }
  0x1e   :  { %594 = vsyncadd [#allocation5], 4294967280 }
  0x1f   :  { %595 = dma.done.wait [#allocation3], 512  }
  0x20   :  { %596 = vsyncadd [#allocation3], 4294966784 }
  0x21   :  { %53 = sfence }
  0x22   :  { %v57_v0 = vld [vmem:[#allocation6] sm:$0xff]  ;;  %v58_v1 = vld [vmem:[#allocation6 + $0x8] sm:$0xff]  ;;  %v59_v2 = vld [vmem:[#allocation6 + $0x10] sm:$0xff]  ;;  %v603_v3 = vmov 0.0|0.0   ;;  %vm604_vm0 = vmmov 0   ;;  %v605_v6 = vmov 0.0  }
  0x23   :  { %475 = vmatprep.subr.bf16.mxu0 %v603_v3  ;;  %v476_v4 = vpack.c.bf16 %v58_v1, %v57_v0  ;;  %v60_v5 = vld [vmem:[#allocation6 + $0x18] sm:$0xff]  ;;  %402 = vmatprep.mubr.msk.f32.mxu0 %vm604_vm0, %v605_v6  ;;  %v144_v7 = vld [vmem:[%s806_s3] sm:$0xff]  ;;  %v145_v8 = vld [vmem:[%s806_s3 + $0x8] sm:$0xff]  ;;  %vm66_vm1 = vcmask 261120   ;;  %s54_s27 = sld [smem:[#allocation2]]  ;;  %vm332_vm4 = vcmask 130048  }
  0x24   :  { %481 = vmatprep.subr.bf16.mxu1 %v603_v3  ;;  %v146_v9 = vld [vmem:[%s806_s3 + $0x10] sm:$0xff]  ;;  %v147_v10 = vld [vmem:[%s806_s3 + $0x18] sm:$0xff]  ;;  %437 = vmatprep.mubr.msk.f32.mxu1 %vm604_vm0, %v605_v6  ;;  %v479_v11 = vpack.c.bf16 %v60_v5, %v59_v2  ;;  %v482_v12 = vpack.c.bf16 %v145_v8, %v144_v7  ;;  %v148_v14 = vld [vmem:[%s806_s3 + $0x20] sm:$0xff] }
  0x25   :  { %477 = vmatpush3.bf16.msra.mxu0 %v476_v4  ;;  %v485_v13 = vpack.c.bf16 %v147_v10, %v146_v9  ;;  %v149_v15 = vld [vmem:[%s806_s3 + $0x28] sm:$0xff]  ;;  %v56_v16 = vld [vmem:[%s804_s1] sm:$0xff]  ;;  %v150_v18 = vld [vmem:[%s806_s3 + $0x30] sm:$0xff] }
  0x26   :  { %478 = vmatprep.subr.bf16.mxu0 %v603_v3  ;;  %483 = vmatpush3.bf16.msra.mxu1 %v482_v12  ;;  %v488_v17 = vpack.c.bf16 %v149_v15, %v148_v14  ;;  %v151_v19 = vld [vmem:[%s806_s3 + $0x38] sm:$0xff]  ;;  %v152_v21 = vld [vmem:[%s806_s3 + $0x40] sm:$0xff]  ;;  %v153_v22 = vld [vmem:[%s806_s3 + $0x48] sm:$0xff] }
  0x27   :  { %484 = vmatprep.subr.bf16.mxu1 %v603_v3  ;;  %v491_v20 = vpack.c.bf16 %v151_v19, %v150_v18  ;;  %v494_v23 = vpack.c.bf16 %v153_v22, %v152_v21  ;;  %v154_v24 = vld [vmem:[%s806_s3 + $0x50] sm:$0xff]  ;;  %v155_v25 = vld [vmem:[%s806_s3 + $0x58] sm:$0xff]  ;;  %v156_v27 = vld [vmem:[%s806_s3 + $0x60] sm:$0xff] }
  0x28   :  { %v497_v26 = vpack.c.bf16 %v155_v25, %v154_v24  ;;  %v157_v28 = vld [vmem:[%s806_s3 + $0x68] sm:$0xff]  ;;  %v158_v30 = vld [vmem:[%s806_s3 + $0x70] sm:$0xff]  ;;  %v159_v31 = vld [vmem:[%s806_s3 + $0x78] sm:$0xff]  ;;  %s350_s3 = sld [smem:[#allocation2 + $0x1]] }
  0x29   :  { %480 = vmatpush3.bf16.msra.mxu0 %v479_v11  ;;  %v500_v29 = vpack.c.bf16 %v157_v28, %v156_v27  ;;  %v503_v32 = vpack.c.bf16 %v159_v31, %v158_v30  ;;  %v239_v33 = vld [vmem:[%s807_s4] sm:$0xff]  ;;  %v240_v34 = vld [vmem:[%s807_s4 + $0x8] sm:$0xff]  ;;  %v241_v35 = vld [vmem:[%s807_s4 + $0x10] sm:$0xff]  ;;  %v141_v56 = vstv %s54_s27 }
  0x2a   :  { %505 = vmatprep.subr.bf16.mxu0 %v603_v3  ;;  %486 = vmatpush3.bf16.msra.mxu1 %v485_v13  ;;  %v506_v36 = vpack.c.bf16 %v240_v34, %v239_v33  ;;  %v242_v37 = vld [vmem:[%s807_s4 + $0x18] sm:$0xff]  ;;  %v243_v39 = vld [vmem:[%s807_s4 + $0x20] sm:$0xff]  ;;  %v244_v40 = vld [vmem:[%s807_s4 + $0x28] sm:$0xff] }
  0x2b   :  { %487 = vmatprep.subr.bf16.mxu1 %v603_v3  ;;  %v509_v38 = vpack.c.bf16 %v242_v37, %v241_v35  ;;  %v512_v41 = vpack.c.bf16 %v244_v40, %v243_v39  ;;  %v245_v42 = vld [vmem:[%s807_s4 + $0x30] sm:$0xff]  ;;  %v246_v43 = vld [vmem:[%s807_s4 + $0x38] sm:$0xff]  ;;  %v247_v45 = vld [vmem:[%s807_s4 + $0x40] sm:$0xff] }
  0x2c   :  { %403 = vmatmul.mubr.msk.f32.vlgmr.msra.gmra.mrb[0].mxu0 %vm66_vm1, %v56_v16  ;;  %v515_v44 = vpack.c.bf16 %v246_v43, %v245_v42  ;;  %v248_v46 = vld [vmem:[%s807_s4 + $0x48] sm:$0xff]  ;;  %v249_v48 = vld [vmem:[%s807_s4 + $0x50] sm:$0xff]  ;;  %v250_v49 = vld [vmem:[%s807_s4 + $0x58] sm:$0xff] }
  0x2d   :  { %472 = vmatprep.mubr.msk.f32.mxu0 %vm604_vm0, %v605_v6  ;;  %507 = vmatpush3.bf16.msra.mxu0 %v506_v36  ;;  %v518_v47 = vpack.c.bf16 %v248_v46, %v247_v45  ;;  %v521_v50 = vpack.c.bf16 %v250_v49, %v249_v48  ;;  %v251_v51 = vld [vmem:[%s807_s4 + $0x60] sm:$0xff]  ;;  %v252_v52 = vld [vmem:[%s807_s4 + $0x68] sm:$0xff]  ;;  %v253_v61 = vld [vmem:[%s807_s4 + $0x70] sm:$0xff] }
  0x2e   :  { %489 = vmatpush3.bf16.msra.mxu1 %v488_v17  ;;  %508 = vmatprep.subr.bf16.mxu0 %v603_v3  ;;  %v524_v53 = vpack.c.bf16 %v252_v52, %v251_v51  ;;  %v351_v54 = vld [vmem:[%s808_s5] ss:$0 sm:$0xff]  ;;  %v254_v62 = vld [vmem:[%s807_s4 + $0x78] sm:$0xff]  ;;  %v353_v0 = vld [vmem:[%s808_s5 + $0x1] ss:$0 sm:$0xff]  ;;  %v236_v2 = vstv %s350_s3  ;;  %s606_s4 = smov [#allocation7]  }
  0x2f   :  { %490 = vmatprep.subr.bf16.mxu1 %v603_v3  ;;  %v527_v63 = vpack.c.bf16 %v254_v62, %v253_v61  ;;  %v354_v7 = vld [vmem:[%s809_s6] ss:$0 sm:$0xff]  ;;  %s340_s13 = sshll.u32 %s606_s4, 4  ;;  %s341_s13 = int_to_ptr.vmem [resolvable:$true] %s340_s13 }
  0x30   :  { %s571_s5 = scalar_lea.vmem %s341_s13, 128  ;;  %p576_p0 = scmp.lt.s32.totalorder %s341_s13, %s341_s13 }
  0x31   :  { %510 = vmatpush3.bf16.msra.mxu0 %v509_v38  ;;  %p572_p13 = scmp.ne.s32.totalorder %s341_s13, %s571_s5  ;;  %p577_p1 = scmp.lt.s32.totalorder %s571_s5, %s571_s5 }
  0x32   :  { %492 = vmatpush3.bf16.msra.mxu1 %v491_v20  ;;  %511 = vmatprep.subr.bf16.mxu0 %v603_v3 }
  0x33   :  { %493 = vmatprep.subr.bf16.mxu1 %v603_v3  ;;  %p578_p2 = por %p577_p1, %p576_p0 }
  0x35   :  { %513 = vmatpush3.bf16.msra.mxu0 %v512_v41  ;;  %p579_p3 = pnand %p578_p2, %p572_p13 }
  0x36   :  { %495 = vmatpush3.bf16.msra.mxu1 %v494_v23  ;;  %514 = vmatprep.subr.bf16.mxu0 %v603_v3 }
  0x37   :  { %496 = vmatprep.subr.bf16.mxu1 %v603_v3 }
  0x39   :  { %516 = vmatpush3.bf16.msra.mxu0 %v515_v44 }
  0x3a   :  { %498 = vmatpush3.bf16.msra.mxu1 %v497_v26  ;;  %517 = vmatprep.subr.bf16.mxu0 %v603_v3 }
  0x3b   :  { %499 = vmatprep.subr.bf16.mxu1 %v603_v3 }
  0x3d   :  { %519 = vmatpush3.bf16.msra.mxu0 %v518_v47 }
  0x3e   :  { %501 = vmatpush3.bf16.msra.mxu1 %v500_v29  ;;  %520 = vmatprep.subr.bf16.mxu0 %v603_v3 }
  0x3f   :  { %502 = vmatprep.subr.bf16.mxu1 %v603_v3 }
  0x41   :  { %522 = vmatpush3.bf16.msra.mxu0 %v521_v50 }
  0x42   :  { %504 = vmatpush3.bf16.msra.mxu1 %v503_v32  ;;  %523 = vmatprep.subr.bf16.mxu0 %v603_v3 }
  0x45   :  { %525 = vmatpush3.bf16.msra.mxu0 %v524_v53 }
  0x46   :  { %526 = vmatprep.subr.bf16.mxu0 %v603_v3 }
  0x49   :  { %528 = vmatpush3.bf16.msra.mxu0 %v527_v63 }
  0xff   :  { %v136_v55 = vpop.f32.mrb[0].mxu0 }
 0x100   :  { %v137_v57 = vadd.f32 %v351_v54, %v136_v55  ;;  %v404_v58 = vpop.f32.mrb[1].mxu0 }
 0x102   :  { %v142_v59 = vmul.f32 %v141_v56, %v137_v57  ;;  %vm140_vm2 = vcmp.ge.f32.partialorder %v137_v57, 0.0 }
 0x104   :  { %v143_v60 = vsel %vm140_vm2, %v137_v57, %v142_v59 }
 0x105   :  { %438 = vmatmul.mubr.f32.vlgmr.msra.gmra.mrb[0].mxu1 %v143_v60 }
 0x1d8   :  { %v231_v1 = vpop.f32.mrb[0].mxu1 }
 0x1d9   :  { %v232_v3 = vadd.f32 %v353_v0, %v231_v1  ;;  %v439_v4 = vpop.f32.mrb[1].mxu1 }
 0x1db   :  { %vm235_vm3 = vcmp.ge.f32.partialorder %v232_v3, 0.0  ;;  %v237_v5 = vmul.f32 %v236_v2, %v232_v3 }
 0x1dd   :  { %v238_v6 = vsel %vm235_vm3, %v232_v3, %v237_v5 }
 0x1de   :  { %473 = vmatmul.mubr.f32.vlgmr.msra.gmra.mrb[2].mxu0 %v238_v6 }
 0x2b1   :  { %v328_v8 = vpop.f32.mrb[2].mxu0 }
 0x2b2   :  { %v329_v9 = vadd.f32 %v354_v7, %v328_v8  ;;  %v474_v10 = vpop.f32.mrb[3].mxu0 }
 0x2b4   :  { %333 = vst.msk [vmem:[#allocation7] sm:$0xff] %vm332_vm4, %v329_v9 }
 0x2b5   :  { %582 = shalt.err (!%p579_p3)
}
 0x2b6   :  { %s583_s16 = scalar_lea.hbm %s810_s7, 128 }
 0x2b7   :  { %p584_p4 = scmp.ne.s32.totalorder %s810_s7, %s583_s16  ;;  %p587_p5 = scmp.lt.u32.totalorder %s583_s16, %s810_s7 }
 0x2b9   :  { %p589_p6 = pnand %p587_p5, %p584_p4 }
 0x2bb   :  { %592 = shalt.err (!%p589_p6)
}
 0x2bc   :  { %343 = dma.vmem_to_hbm [thread:$0]  %s341_s13, 128, %s810_s7, [#allocation4]  }
 0x2bd   :  { %597 = dma.done.wait [#allocation4], 128  }
 0x2be   :  { %598 = vsyncadd [#allocation4], 4294967168 }
 0x2bf   :  { %347 = vsyncpa [#allocation3], 1 }
 0x2c0   :  { %348 = vsyncpa [#allocation4], 1 }
 0x2c1   :  { %349 = vsyncpa [#allocation5], 1 }

</bundles_post_ra>
